<compile_context>
chip_gen: v7x
topology: tpu7x:2x2x1
jax: 0.10.0
libtpu: 0.0.40
codegen_flags: <defaults>
</compile_context>

<pallas_src>
import numpy as np

import jax
import jax.numpy as jnp
from jax.experimental import pallas as pl
from jax.experimental.pallas import tpu as pltpu


# ----------------------------------------------------------------------------
# Pallas kernel: label attention + logits for one (batch-tile, label-tile)
# ----------------------------------------------------------------------------
def _label_attn_kernel(e_ref, w0t_ref, w1t_ref, le_ref, out_ref):
    # e_ref  : (C, Bt, D)   chunk embeddings (chunk-major, D lane-dense)
    # w0t_ref: (D, H)       W0^T
    # w1t_ref: (H, Lt)      W1^T  (label tile)
    # le_ref : (D, Lt)      label embeddings (label tile)
    # out_ref: (Bt, Lt)     logits tile (f32)
    C, Bt, D = e_ref.shape
    Lt = out_ref.shape[1]
    mm_dtype = w1t_ref.dtype

    # Fold the chunk axis into the matmul M dimension.  Bt % 8 == 0 so this
    # leading-dim merge is sublane-aligned (no relayout); 3 large matmuls fill
    # the MXU instead of 3*C tiny ones.
    e = e_ref[...].reshape(C * Bt, D)
    w0t = w0t_ref[...]
    w1t = w1t_ref[...]
    le = le_ref[...]

    t0 = jnp.tanh(jnp.dot(e, w0t, preferred_element_type=jnp.float32))      # (C*Bt, H) f32
    scores = jnp.dot(t0.astype(mm_dtype), w1t,
                     preferred_element_type=jnp.float32).reshape(C, Bt, Lt)  # f32
    svals = jnp.dot(e, le,
                    preferred_element_type=jnp.float32).reshape(C, Bt, Lt)   # f32

    # Softmax over the chunk axis fused with the final label reduction:
    #   logits[b, l] = sum_c softmax_c(scores)[c, b, l] * svals[c, b, l]
    # The chunk axis indexes separate (Bt, Lt) tiles, so all reductions are
    # cheap elementwise VPU ops; accumulate chunk-by-chunk to keep the number
    # of live (Bt, Lt) intermediates small (no spill pressure at large Lt).
    m = scores[0]
    for c in range(1, C):
        m = jnp.maximum(m, scores[c])
    p = jnp.exp(scores[0] - m)
    denom = p
    acc = p * svals[0]
    for c in range(1, C):
        p = jnp.exp(scores[c] - m)
        denom = denom + p
        acc = acc + p * svals[c]
    inv = pl.reciprocal(denom, approx=True)        # EUP slot
    out_ref[...] = (acc * inv).astype(out_ref.dtype)


# ----------------------------------------------------------------------------
# Tiling helpers (generation-aware VMEM budgeting)
# ----------------------------------------------------------------------------
def _round_up(x, m):
    return (x + m - 1) // m * m


def _vmem_capacity_bytes():
    # 64 MiB per TC on v7x, 128 MiB on v5e/v6e.  Conservative fallback.
    try:
        return int(pltpu.get_tpu_info().vmem_capacity_bytes)
    except Exception:
        return 64 * 1024 * 1024


def _pick_block_b(batch_padded, chunk_num, embd_dim, itemsize, budget_bytes):
    """Largest multiple-of-8 divisor of batch_padded whose (C, Bt, D) block fits
    the byte budget.  batch_padded is a multiple of 8, so Bt=8 always works."""
    best = 8
    d = 8
    while d <= batch_padded:
        if batch_padded % d == 0 and chunk_num * d * embd_dim * itemsize <= budget_bytes:
            best = d
        d += 8
    return best


def _pick_block_l(l_padded, d_dim, h_dim, itemsize, budget_bytes, hard_cap=2048):
    """Largest multiple-of-128 divisor of l_padded whose W1/label_emb column
    blocks fit the byte budget (and a hard cap to keep plenty of grid steps)."""
    cap = max(128, (budget_bytes // max(1, (d_dim + h_dim) * itemsize)) // 128 * 128)
    cap = min(cap, hard_cap)
    m = l_padded // 128
    best = 1
    for f in range(1, m + 1):
        if m % f == 0 and 128 * f <= cap:
            best = f
    return 128 * best


# ----------------------------------------------------------------------------
# Wrapper: layout plumbing, padding, tiling, pallas_call
# ----------------------------------------------------------------------------
def label_attention(e_cbd, w0, w1, label_emb, *, block_b=None, block_l=None,
                    matmul_dtype=jnp.float32):
    """e_cbd: (C, B, D) chunk embeddings (chunk-major) -> logits (B, L) f32.

    matmul_dtype=jnp.bfloat16 halves streamed bytes and uses the fast MXU path
    on v5e/v6e/v7x (f32 accumulation); elementwise math is always f32.
    """
    C, B, D = e_cbd.shape
    H, L = w0.shape[0], w1.shape[0]
    assert w0.shape == (H, D) and w1.shape == (L, H) and label_emb.shape == (D, L)

    # --- wrapper-side layout plumbing (kernel only sees row-major 2-D matmuls) ---
    w0t = jnp.swapaxes(w0, 0, 1)            # (D, H)
    w1t = jnp.swapaxes(w1, 0, 1)            # (H, L)
    le = label_emb                          # (D, L)

    # Pad labels to a lane-dense multiple of 128 and batch to a multiple of 8.
    Lp = _round_up(L, 128)
    if Lp != L:
        w1t = jnp.pad(w1t, ((0, 0), (0, Lp - L)))
        le = jnp.pad(le, ((0, 0), (0, Lp - L)))
    Bp = _round_up(B, 8)
    if Bp != B:
        e_cbd = jnp.pad(e_cbd, ((0, 0), (0, Bp - B), (0, 0)))

    # One-time casts of the MXU operands (no per-grid-step casts in the kernel).
    e_cbd = e_cbd.astype(matmul_dtype)
    w0t = w0t.astype(matmul_dtype)
    w1t = w1t.astype(matmul_dtype)
    le = le.astype(matmul_dtype)
    itemsize = np.dtype(matmul_dtype).itemsize

    vmem_cap = _vmem_capacity_bytes()
    if block_l is None:
        block_l = _pick_block_l(Lp, D, H, itemsize, budget_bytes=vmem_cap // 16)
    if block_b is None:
        block_b = _pick_block_b(Bp, C, D, itemsize, budget_bytes=vmem_cap // 16)
    assert Bp % block_b == 0 and block_b % 8 == 0
    assert Lp % block_l == 0 and block_l % 128 == 0
    nb, nl = Bp // block_b, Lp // block_l
    # v7x has 2 TensorCores: split a single-step grid along batch when possible.
    if nb * nl == 1 and Bp % 16 == 0:
        block_b = Bp // 2
        nb = 2

    flops = 2 * Bp * C * (D * H + H * Lp + D * Lp)
    transcendentals = Bp * C * (H + Lp) + Bp * Lp
    bytes_accessed = (itemsize * (Bp * C * D + D * H + nb * Lp * (H + D))
                      + 4 * Bp * Lp)

    # NOTE: the grid-invariant W0^T block could additionally be single-buffered
    # (pipeline_mode=pl.Buffered(1)) to shave VMEM on v7x; left at the default
    # double-buffering here since it is tiny relative to the L-tiled operands.
    out = pl.pallas_call(
        _label_attn_kernel,
        out_shape=jax.ShapeDtypeStruct((Bp, Lp), jnp.float32),
        grid=(nb, nl),
        in_specs=[
            # E tile constant along the inner L axis -> fetched once per batch tile.
            pl.BlockSpec((C, block_b, D), lambda i, j: (0, i, 0)),
            pl.BlockSpec((D, H), lambda i, j: (0, 0)),
            pl.BlockSpec((H, block_l), lambda i, j: (0, j)),
            pl.BlockSpec((D, block_l), lambda i, j: (0, j)),
        ],
        out_specs=pl.BlockSpec((block_b, block_l), lambda i, j: (i, j)),
        compiler_params=pltpu.CompilerParams(
            dimension_semantics=("parallel", "parallel"),
            vmem_limit_bytes=int(vmem_cap // 2)),
        cost_estimate=pl.CostEstimate(flops=flops,
                                      transcendentals=transcendentals,
                                      bytes_accessed=bytes_accessed),
    )(e_cbd, w0t, w1t, le)
    return out[:B, :L]


# ----------------------------------------------------------------------------
# Module wrapper (parameter setup + LM stub in plain JAX glue)
# ----------------------------------------------------------------------------
class PlmMultiLabelEncoderPallas:
    def __init__(self, label_num, lm_embd_dim, chunk_size=8, chunk_num=5,
                 first_attn_hidden_dim=64, vocab_size=100,
                 matmul_dtype=jnp.float32, key=None):
        if key is None:
            key = jax.random.PRNGKey(0)
        k0, k1, k2, k3 = jax.random.split(key, 4)
        self.label_num = label_num
        self.lm_embd_dim = lm_embd_dim
        self.chunk_size = chunk_size
        self.chunk_num = chunk_num
        # bf16 matmul operands recommended at production sizes; f32 default
        # keeps bitwise-close parity with the PyTorch reference here.
        self.matmul_dtype = matmul_dtype
        # torch.rand -> uniform [0, 1); parameters keep PyTorch orientation.
        self.w0 = jax.random.uniform(k0, (first_attn_hidden_dim, lm_embd_dim),
                                     dtype=jnp.float32)
        self.w1 = jax.random.uniform(k1, (label_num, first_attn_hidden_dim),
                                     dtype=jnp.float32)
        self.label_emb = jax.random.uniform(k2, (lm_embd_dim, label_num),
                                            dtype=jnp.float32)
        # TODO(synk): the pretrained transformer LM (AutoModel) is replaced by a
        # deterministic last-token embedding-lookup stub.
        self.lm_embed_table = jax.random.uniform(k3, (vocab_size, lm_embd_dim),
                                                 dtype=jnp.float32)

    def _lm_stub(self, unnested_token_ids, unnested_attn_masks):
        # Mimics hidden_states[-1][:, -1, :] : one (D,) vector per chunk row.
        del unnested_attn_masks
        last_tok = unnested_token_ids[:, -1]
        return jnp.take(self.lm_embed_table, last_tok, axis=0)   # (rows, D)

    def __call__(self, token_ids, attn_masks):
        assert token_ids.ndim == 3
        assert token_ids.shape[1] == self.chunk_num
        assert token_ids.shape[2] == self.chunk_size
        assert token_ids.shape == attn_masks.shape
        B = token_ids.shape[0]
        # Chunk-major reorder of the cheap int32 ids so the LM stub emits a
        # (C*B, D) slab that reshapes directly to (C, B, D) - no f32 activation
        # transpose in front of the kernel.
        ids_cm = jnp.swapaxes(token_ids, 0, 1).reshape(-1, self.chunk_size)
        masks_cm = jnp.swapaxes(attn_masks, 0, 1).reshape(-1, self.chunk_size)
        emb = self._lm_stub(ids_cm, masks_cm)                              # (C*B, D)
        e_cbd = emb.reshape(self.chunk_num, B, self.lm_embd_dim)            # (C, B, D)
        return label_attention(e_cbd, self.w0, self.w1, self.label_emb,
                               matmul_dtype=self.matmul_dtype)              # (B, L)

    # Pure-JAX reference of the post-LM compute, mirroring the PyTorch math.
    def reference(self, token_ids, attn_masks):
        B = token_ids.shape[0]
        unnested_ids = token_ids.reshape(-1, self.chunk_size)
        unnested_emb = self._lm_stub(unnested_ids, None)
        chunk_emb = unnested_emb.reshape(B, self.chunk_num, self.lm_embd_dim)
        e = jnp.swapaxes(chunk_emb, 2, 1)                                   # (B, D, C)
        t0 = jnp.tanh(jnp.einsum('hd,bdc->bhc', self.w0, e))
        t1 = jnp.einsum('lh,bhc->blc', self.w1, t0)
        a = jax.nn.softmax(t1, axis=2)
        wc = jnp.einsum('bdc,blc->bdl', e, a)
        return jnp.sum(wc * self.label_emb[None], axis=1)


if __name__ == "__main__":
    # Small shapes: batch=2, chunk_num=5, chunk_size=8, lm_embd_dim=32,
    # first_attn_hidden_dim=64, label_num=16.
    key = jax.random.PRNGKey(0)
    k_model, k_ids = jax.random.split(key)

    model = PlmMultiLabelEncoderPallas(
        label_num=16, lm_embd_dim=32, chunk_size=8, chunk_num=5,
        first_attn_hidden_dim=64, vocab_size=100, key=k_model)

    token_ids = jax.random.randint(k_ids, (2, 5, 8), 0, 100, dtype=jnp.int32)
    attn_masks = jnp.ones_like(token_ids)

    logits = jax.block_until_ready(model(token_ids, attn_masks))
    ref = model.reference(token_ids, attn_masks)

    assert logits.shape == (2, 16)
    # Tolerance covers the EUP approximate reciprocal used for the softmax
    # denominator (all other math is exact f32).
    assert jnp.allclose(logits, ref, rtol=5e-3, atol=5e-3), \
        float(jnp.max(jnp.abs(logits - ref)))

    print("KERNEL_OK")
</pallas_src>

<mosaic_0001>
module attributes {stable_mosaic.version = 11 : i64} {
  func.func @_label_attn_kernel(%arg0: i32, %arg1: i32, %arg2: memref<5x8x32xf32, #tpu.memory_space<vmem>>, %arg3: memref<32x64xf32, #tpu.memory_space<vmem>>, %arg4: memref<64x128xf32, #tpu.memory_space<vmem>>, %arg5: memref<32x128xf32, #tpu.memory_space<vmem>>, %arg6: memref<8x128xf32, #tpu.memory_space<vmem>>) attributes {dimension_semantics = [#tpu.dimension_semantics<parallel>, #tpu.dimension_semantics<parallel>], iteration_bounds = array<i64: 1, 1>, scalar_prefetch = 0 : i64, scratch_operands = 0 : i64, tpu.core_type = #tpu.core_type<tc>, window_params = [{transform_indices = @transform_0, window_bounds = array<i64: 5, 8, 32>}, {pipeline_mode = #tpu.pipeline_mode<synchronous>, transform_indices = @transform_1, window_bounds = array<i64: 32, 64>}, {transform_indices = @transform_2, window_bounds = array<i64: 64, 128>}, {transform_indices = @transform_3, window_bounds = array<i64: 32, 128>}, {transform_indices = @transform_4, window_bounds = array<i64: 8, 128>}]} {
    %c0 = arith.constant 0 : index
    %c0_0 = arith.constant 0 : index
    %c0_1 = arith.constant 0 : index
    %0 = vector.load %arg2[%c0, %c0_0, %c0_1] : memref<5x8x32xf32, #tpu.memory_space<vmem>>, vector<5x8x32xf32>
    %1 = vector.shape_cast %0 : vector<5x8x32xf32> to vector<40x32xf32>
    %c0_2 = arith.constant 0 : index
    %c0_3 = arith.constant 0 : index
    %2 = vector.load %arg3[%c0_2, %c0_3] : memref<32x64xf32, #tpu.memory_space<vmem>>, vector<32x64xf32>
    %c0_4 = arith.constant 0 : index
    %c0_5 = arith.constant 0 : index
    %3 = vector.load %arg4[%c0_4, %c0_5] : memref<64x128xf32, #tpu.memory_space<vmem>>, vector<64x128xf32>
    %c0_6 = arith.constant 0 : index
    %c0_7 = arith.constant 0 : index
    %4 = vector.load %arg5[%c0_6, %c0_7] : memref<32x128xf32, #tpu.memory_space<vmem>>, vector<32x128xf32>
    %cst = arith.constant dense<0.000000e+00> : vector<40x64xf32>
    %5 = tpu.matmul %1, %2, %cst {dimension_numbers = #tpu.dot_dimension_numbers<[1], [0], [0], [1], [0, 0, 1, 1], [], []>} : vector<40x32xf32>, vector<32x64xf32>, vector<40x64xf32> -> vector<40x64xf32>
    %6 = math.tanh %5 : vector<40x64xf32>
    %cst_8 = arith.constant dense<0.000000e+00> : vector<40x128xf32>
    %7 = tpu.matmul %6, %3, %cst_8 {dimension_numbers = #tpu.dot_dimension_numbers<[1], [0], [0], [1], [0, 0, 1, 1], [], []>} : vector<40x64xf32>, vector<64x128xf32>, vector<40x128xf32> -> vector<40x128xf32>
    %8 = vector.shape_cast %7 : vector<40x128xf32> to vector<5x8x128xf32>
    %cst_9 = arith.constant dense<0.000000e+00> : vector<40x128xf32>
    %9 = tpu.matmul %1, %4, %cst_9 {dimension_numbers = #tpu.dot_dimension_numbers<[1], [0], [0], [1], [0, 0, 1, 1], [], []>} : vector<40x32xf32>, vector<32x128xf32>, vector<40x128xf32> -> vector<40x128xf32>
    %10 = vector.shape_cast %9 : vector<40x128xf32> to vector<5x8x128xf32>
    %11 = vector.extract_strided_slice %8 {offsets = [0, 0, 0], sizes = [1, 8, 128], strides = [1, 1, 1]} : vector<5x8x128xf32> to vector<1x8x128xf32>
    %12 = vector.shape_cast %11 : vector<1x8x128xf32> to vector<8x128xf32>
    %13 = vector.extract_strided_slice %8 {offsets = [1, 0, 0], sizes = [1, 8, 128], strides = [1, 1, 1]} : vector<5x8x128xf32> to vector<1x8x128xf32>
    %14 = vector.shape_cast %13 : vector<1x8x128xf32> to vector<8x128xf32>
    %15 = arith.maximumf %12, %14 : vector<8x128xf32>
    %16 = vector.extract_strided_slice %8 {offsets = [2, 0, 0], sizes = [1, 8, 128], strides = [1, 1, 1]} : vector<5x8x128xf32> to vector<1x8x128xf32>
    %17 = vector.shape_cast %16 : vector<1x8x128xf32> to vector<8x128xf32>
    %18 = arith.maximumf %15, %17 : vector<8x128xf32>
    %19 = vector.extract_strided_slice %8 {offsets = [3, 0, 0], sizes = [1, 8, 128], strides = [1, 1, 1]} : vector<5x8x128xf32> to vector<1x8x128xf32>
    %20 = vector.shape_cast %19 : vector<1x8x128xf32> to vector<8x128xf32>
    %21 = arith.maximumf %18, %20 : vector<8x128xf32>
    %22 = vector.extract_strided_slice %8 {offsets = [4, 0, 0], sizes = [1, 8, 128], strides = [1, 1, 1]} : vector<5x8x128xf32> to vector<1x8x128xf32>
    %23 = vector.shape_cast %22 : vector<1x8x128xf32> to vector<8x128xf32>
    %24 = arith.maximumf %21, %23 : vector<8x128xf32>
    %25 = vector.extract_strided_slice %8 {offsets = [0, 0, 0], sizes = [1, 8, 128], strides = [1, 1, 1]} : vector<5x8x128xf32> to vector<1x8x128xf32>
    %26 = vector.shape_cast %25 : vector<1x8x128xf32> to vector<8x128xf32>
    %27 = arith.subf %26, %24 : vector<8x128xf32>
    %28 = math.exp %27 : vector<8x128xf32>
    %29 = vector.extract_strided_slice %10 {offsets = [0, 0, 0], sizes = [1, 8, 128], strides = [1, 1, 1]} : vector<5x8x128xf32> to vector<1x8x128xf32>
    %30 = vector.shape_cast %29 : vector<1x8x128xf32> to vector<8x128xf32>
    %31 = arith.mulf %28, %30 : vector<8x128xf32>
    %32 = vector.extract_strided_slice %8 {offsets = [1, 0, 0], sizes = [1, 8, 128], strides = [1, 1, 1]} : vector<5x8x128xf32> to vector<1x8x128xf32>
    %33 = vector.shape_cast %32 : vector<1x8x128xf32> to vector<8x128xf32>
    %34 = arith.subf %33, %24 : vector<8x128xf32>
    %35 = math.exp %34 : vector<8x128xf32>
    %36 = arith.addf %28, %35 : vector<8x128xf32>
    %37 = vector.extract_strided_slice %10 {offsets = [1, 0, 0], sizes = [1, 8, 128], strides = [1, 1, 1]} : vector<5x8x128xf32> to vector<1x8x128xf32>
    %38 = vector.shape_cast %37 : vector<1x8x128xf32> to vector<8x128xf32>
    %39 = arith.mulf %35, %38 : vector<8x128xf32>
    %40 = arith.addf %31, %39 : vector<8x128xf32>
    %41 = vector.extract_strided_slice %8 {offsets = [2, 0, 0], sizes = [1, 8, 128], strides = [1, 1, 1]} : vector<5x8x128xf32> to vector<1x8x128xf32>
    %42 = vector.shape_cast %41 : vector<1x8x128xf32> to vector<8x128xf32>
    %43 = arith.subf %42, %24 : vector<8x128xf32>
    %44 = math.exp %43 : vector<8x128xf32>
    %45 = arith.addf %36, %44 : vector<8x128xf32>
    %46 = vector.extract_strided_slice %10 {offsets = [2, 0, 0], sizes = [1, 8, 128], strides = [1, 1, 1]} : vector<5x8x128xf32> to vector<1x8x128xf32>
    %47 = vector.shape_cast %46 : vector<1x8x128xf32> to vector<8x128xf32>
    %48 = arith.mulf %44, %47 : vector<8x128xf32>
    %49 = arith.addf %40, %48 : vector<8x128xf32>
    %50 = vector.extract_strided_slice %8 {offsets = [3, 0, 0], sizes = [1, 8, 128], strides = [1, 1, 1]} : vector<5x8x128xf32> to vector<1x8x128xf32>
    %51 = vector.shape_cast %50 : vector<1x8x128xf32> to vector<8x128xf32>
    %52 = arith.subf %51, %24 : vector<8x128xf32>
    %53 = math.exp %52 : vector<8x128xf32>
    %54 = arith.addf %45, %53 : vector<8x128xf32>
    %55 = vector.extract_strided_slice %10 {offsets = [3, 0, 0], sizes = [1, 8, 128], strides = [1, 1, 1]} : vector<5x8x128xf32> to vector<1x8x128xf32>
    %56 = vector.shape_cast %55 : vector<1x8x128xf32> to vector<8x128xf32>
    %57 = arith.mulf %53, %56 : vector<8x128xf32>
    %58 = arith.addf %49, %57 : vector<8x128xf32>
    %59 = vector.extract_strided_slice %8 {offsets = [4, 0, 0], sizes = [1, 8, 128], strides = [1, 1, 1]} : vector<5x8x128xf32> to vector<1x8x128xf32>
    %60 = vector.shape_cast %59 : vector<1x8x128xf32> to vector<8x128xf32>
    %61 = arith.subf %60, %24 : vector<8x128xf32>
    %62 = math.exp %61 : vector<8x128xf32>
    %63 = arith.addf %54, %62 : vector<8x128xf32>
    %64 = vector.extract_strided_slice %10 {offsets = [4, 0, 0], sizes = [1, 8, 128], strides = [1, 1, 1]} : vector<5x8x128xf32> to vector<1x8x128xf32>
    %65 = vector.shape_cast %64 : vector<1x8x128xf32> to vector<8x128xf32>
    %66 = arith.mulf %62, %65 : vector<8x128xf32>
    %67 = arith.addf %58, %66 : vector<8x128xf32>
    %68 = tpu.reciprocal %63 {approx = true} : vector<8x128xf32> -> vector<8x128xf32>
    %69 = arith.mulf %67, %68 : vector<8x128xf32>
    %c0_10 = arith.constant 0 : index
    %c0_11 = arith.constant 0 : index
    %70 = vector.load %arg6[%c0_10, %c0_11] : memref<8x128xf32, #tpu.memory_space<vmem>>, vector<8x128xf32>
    tpu.vector_store %arg6[%c0_10, %c0_11], %69 {strides = array<i32>} : memref<8x128xf32, #tpu.memory_space<vmem>>, vector<8x128xf32>,
    return
  }
  func.func @transform_0(%arg0: i32, %arg1: i32) -> (i32, i32, i32) {
    %c0_i32 = arith.constant 0 : i32
    %c0_i32_0 = arith.constant 0 : i32
    %c0_i32_1 = arith.constant 0 : i32
    return %c0_i32, %arg0, %c0_i32_0 : i32, i32, i32
  }
  func.func @transform_1(%arg0: i32, %arg1: i32) -> (i32, i32) {
    %c0_i32 = arith.constant 0 : i32
    %c0_i32_0 = arith.constant 0 : i32
    %c0_i32_1 = arith.constant 0 : i32
    return %c0_i32, %c0_i32_0 : i32, i32
  }
  func.func @transform_2(%arg0: i32, %arg1: i32) -> (i32, i32) {
    %c0_i32 = arith.constant 0 : i32
    %c0_i32_0 = arith.constant 0 : i32
    return %c0_i32, %arg1 : i32, i32
  }
  func.func @transform_3(%arg0: i32, %arg1: i32) -> (i32, i32) {
    %c0_i32 = arith.constant 0 : i32
    %c0_i32_0 = arith.constant 0 : i32
    return %c0_i32, %arg1 : i32, i32
  }
  func.func @transform_4(%arg0: i32, %arg1: i32) -> (i32, i32) {
    %c0_i32 = arith.constant 0 : i32
    return %arg0, %arg1 : i32, i32
  }
}

</mosaic_0001>

<bundles_post_ra>
// kernel: tpu_custom_call.1
= control target key start
LH: loop header
LB: loop body
LE: loop exit
PB: predicated region body
PF: predicated region fallthrough
CT: control target
= control target key end

     0   :  { %9 = vsyncpa [#allocation3], 0  ;;  %s920_s0 = inlined_call_operand.hbm [shape: f32[5,8,32], index: 0, kind: input, shape index: {}]   ;;  %s921_s1 = inlined_call_operand.hbm [shape: f32[32,64], index: 1, kind: input, shape index: {}]   ;;  %s922_s2 = inlined_call_operand.hbm [shape: f32[64,128], index: 2, kind: input, shape index: {}]   ;;  %s923_s3 = inlined_call_operand.hbm [shape: f32[32,128], index: 3, kind: input, shape index: {}]   ;;  %s924_s4 = inlined_call_operand.hbm [shape: f32[8,128], index: 4, kind: output, shape index: {}]  }
   0x1   :  { %10 = vsyncpa [#allocation6], 0 }
   0x2   :  { %11 = vsyncpa [#allocation9], 0 }
   0x3   :  { %12 = vsyncpa [#allocation4], 0  ;;  %s754_s15 = smov [#allocation5]   ;;  %s755_s17 = smov [#allocation2]  }
   0x4   :  { %s30_s16 = sshll.u32 %s754_s15, 4  ;;  %s18_s18 = sshll.u32 %s755_s17, 4  ;;  %s31_s16 = int_to_ptr.vmem [resolvable:$true] %s30_s16  ;;  %s789_s18 = int_to_ptr.vmem [resolvable:$true] %s18_s18 }
   0x5   :  { %s636_s21 = scalar_lea.hbm %s921_s1, 512 }
   0x6   :  { %p637_p0 = scmp.ne.s32.totalorder %s921_s1, %s636_s21  ;;  %p640_p1 = scmp.lt.u32.totalorder %s636_s21, %s921_s1 }
   0x8   :  { %p642_p2 = pnand %p640_p1, %p637_p0 }
   0xa   :  { %645 = shalt.err (!%p642_p2)
}
   0xb   :  { %s646_s26 = scalar_lea.vmem %s31_s16, 512  ;;  %p651_p4 = scmp.lt.s32.totalorder %s31_s16, %s31_s16 }
   0xc   :  { %p647_p3 = scmp.ne.s32.totalorder %s31_s16, %s646_s26  ;;  %p652_p5 = scmp.lt.s32.totalorder %s646_s26, %s646_s26 }
   0xe   :  { %p653_p6 = por %p652_p5, %p651_p4 }
  0x10   :  { %p654_p7 = pnand %p653_p6, %p647_p3 }
  0x12   :  { %657 = shalt.err (!%p654_p7)
}
  0x13   :  { %s756_s27 = smov 128   ;;  %s757_s28 = smov 8  }
  0x14   :  { %36 = dma.hbm_to_vmem [thread:$0]  %s921_s1, 512, %s31_s16, [#allocation6], %s756_s27, %s756_s27, %s757_s28  }
  0x15   :  { %s658_s7 = scalar_lea.hbm %s920_s0, 640 }
  0x16   :  { %p659_p8 = scmp.ne.s32.totalorder %s920_s0, %s658_s7  ;;  %p662_p9 = scmp.lt.u32.totalorder %s658_s7, %s920_s0 }
  0x18   :  { %p664_p10 = pnand %p662_p9, %p659_p8 }
  0x1a   :  { %667 = shalt.err (!%p664_p10)
}
  0x1b   :  { %s668_s12 = scalar_lea.vmem %s789_s18, 640  ;;  %p673_p12 = scmp.lt.s32.totalorder %s789_s18, %s789_s18 }
  0x1c   :  { %p669_p11 = scmp.ne.s32.totalorder %s789_s18, %s668_s12  ;;  %p674_p13 = scmp.lt.s32.totalorder %s668_s12, %s668_s12 }
  0x1e   :  { %p675_p0 = por %p674_p13, %p673_p12 }
  0x20   :  { %p676_p1 = pnand %p675_p0, %p669_p11 }
  0x22   :  { %679 = shalt.err (!%p676_p1)
}
  0x23   :  { %24 = dma.hbm_to_vmem [thread:$0]  %s920_s0, 640, %s789_s18, [#allocation3], %s756_s27, %s756_s27, %s757_s28  }
  0x24   :  { %s758_s14 = smov [#allocation7]   ;;  %s759_s16 = smov [#allocation8]  }
  0x25   :  { %s42_s15 = sshll.u32 %s758_s14, 4  ;;  %s54_s17 = sshll.u32 %s759_s16, 4  ;;  %s43_s15 = int_to_ptr.vmem [resolvable:$true] %s42_s15  ;;  %s826_s17 = int_to_ptr.vmem [resolvable:$true] %s54_s17 }
  0x26   :  { %s680_s21 = scalar_lea.hbm %s922_s2, 1024 }
  0x27   :  { %p681_p2 = scmp.ne.s32.totalorder %s922_s2, %s680_s21  ;;  %p684_p3 = scmp.lt.u32.totalorder %s680_s21, %s922_s2 }
  0x29   :  { %p686_p4 = pnand %p684_p3, %p681_p2 }
  0x2b   :  { %689 = shalt.err (!%p686_p4)
}
  0x2c   :  { %s690_s0 = scalar_lea.vmem %s43_s15, 1024  ;;  %p695_p6 = scmp.lt.s32.totalorder %s43_s15, %s43_s15 }
  0x2d   :  { %p691_p5 = scmp.ne.s32.totalorder %s43_s15, %s690_s0  ;;  %p696_p7 = scmp.lt.s32.totalorder %s690_s0, %s690_s0 }
  0x2f   :  { %p697_p8 = por %p696_p7, %p695_p6 }
  0x31   :  { %p698_p9 = pnand %p697_p8, %p691_p5 }
  0x33   :  { %701 = shalt.err (!%p698_p9)
}
  0x34   :  { %48 = dma.hbm_to_vmem [thread:$0]  %s922_s2, 1024, %s43_s15, [#allocation6], %s756_s27, %s756_s27, %s757_s28  }
  0x35   :  { %s702_s5 = scalar_lea.hbm %s923_s3, 512 }
  0x36   :  { %p703_p10 = scmp.ne.s32.totalorder %s923_s3, %s702_s5  ;;  %p706_p11 = scmp.lt.u32.totalorder %s702_s5, %s923_s3 }
  0x38   :  { %p708_p12 = pnand %p706_p11, %p703_p10 }
  0x3a   :  { %711 = shalt.err (!%p708_p12)
}
  0x3b   :  { %s712_s10 = scalar_lea.vmem %s826_s17, 512  ;;  %p717_p0 = scmp.lt.s32.totalorder %s826_s17, %s826_s17 }
  0x3c   :  { %p713_p13 = scmp.ne.s32.totalorder %s826_s17, %s712_s10  ;;  %p718_p1 = scmp.lt.s32.totalorder %s712_s10, %s712_s10 }
  0x3e   :  { %p719_p2 = por %p718_p1, %p717_p0 }
  0x40   :  { %p720_p3 = pnand %p719_p2, %p713_p13 }
  0x42   :  { %723 = shalt.err (!%p720_p3)
}
  0x43   :  { %60 = dma.hbm_to_vmem [thread:$0]  %s923_s3, 512, %s826_s17, [#allocation9], %s756_s27, %s756_s27, %s757_s28  }
  0x44   :  { %746 = dma.done.wait [#allocation3], 640  }
  0x45   :  { %747 = vsyncadd [#allocation3], 4294966656 }
  0x46   :  { %748 = dma.done.wait [#allocation6], 1536  }
  0x47   :  { %749 = vsyncadd [#allocation6], 4294965760 }
  0x48   :  { %750 = dma.done.wait [#allocation9], 512  }
  0x49   :  { %751 = vsyncadd [#allocation9], 4294966784  ;;  %v760_v0 = vmov 0.0|0.0   ;;  %vm761_vm0 = vmmov 0   ;;  %v762_v1 = vmov 0.0   ;;  %v78_v2 = vld [vmem:[#allocation5] sm:$0xff] }
  0x4a   :  { %576 = vmatprep.subr.bf16.mxu0 %v760_v0  ;;  %600 = vmatprep.subr.bf16.mxu1 %v760_v0  ;;  %v79_v3 = vld [vmem:[#allocation5 + $0x8] sm:$0xff]  ;;  %v80_v4 = vld [vmem:[#allocation5 + $0x10] sm:$0xff]  ;;  %v81_v6 = vld [vmem:[#allocation5 + $0x18] sm:$0xff]  ;;  %vm94_vm1 = vcmask 261120   ;;  %vm205_vm2 = vcmask 523264   ;;  %s763_s3 = smov [#allocation10]  }
  0x4b   :  { %507 = vmatprep.mubr.msk.f32.mxu0 %vm761_vm0, %v762_v1  ;;  %513 = vmatprep.mubr.msk.f32.mxu1 %vm761_vm0, %v762_v1  ;;  %v577_v5 = vpack.c.bf16 %v79_v3, %v78_v2  ;;  %v580_v7 = vpack.c.bf16 %v81_v6, %v80_v4  ;;  %v82_v8 = vld [vmem:[#allocation7] sm:$0xff]  ;;  %v83_v9 = vld [vmem:[#allocation7 + $0x8] sm:$0xff]  ;;  %v73_v10 = vld [vmem:[#allocation2] sm:$0xff]  ;;  %s442_s27 = sshll.u32 %s763_s3, 4  ;;  %s443_s27 = int_to_ptr.vmem [resolvable:$true] %s442_s27 }
  0x4c   :  { %v75_v11 = vld [vmem:[#allocation2 + $0x10] sm:$0xff]  ;;  %v583_v12 = vpack.c.bf16 %v83_v9, %v82_v8  ;;  %v74_v13 = vld [vmem:[#allocation2 + $0x8] sm:$0xff]  ;;  %v76_v14 = vld [vmem:[#allocation2 + $0x18] sm:$0xff]  ;;  %s724_s28 = scalar_lea.vmem %s443_s27, 128  ;;  %p729_p5 = scmp.lt.s32.totalorder %s443_s27, %s443_s27 }
  0x4d   :  { %578 = vmatpush3.bf16.msra.mxu0 %v577_v5  ;;  %602 = vmatpush3.bf16.msra.mxu1 %v577_v5  ;;  %v77_v15 = vld [vmem:[#allocation2 + $0x20] sm:$0xff]  ;;  %v84_v16 = vld [vmem:[#allocation7 + $0x10] sm:$0xff]  ;;  %v86_v19 = vld [vmem:[#allocation7 + $0x20] sm:$0xff]  ;;  %p725_p4 = scmp.ne.s32.totalorder %s443_s27, %s724_s28  ;;  %p730_p6 = scmp.lt.s32.totalorder %s724_s28, %s724_s28 }
  0x4e   :  { %579 = vmatprep.subr.bf16.mxu0 %v760_v0  ;;  %601 = vmatprep.subr.bf16.mxu1 %v760_v0  ;;  %v85_v17 = vld [vmem:[#allocation7 + $0x18] sm:$0xff]  ;;  %v87_v20 = vld [vmem:[#allocation7 + $0x28] sm:$0xff]  ;;  %v88_v22 = vld [vmem:[#allocation7 + $0x30] sm:$0xff] }
  0x4f   :  { %v586_v18 = vpack.c.bf16 %v85_v17, %v84_v16  ;;  %v589_v21 = vpack.c.bf16 %v87_v20, %v86_v19  ;;  %v89_v23 = vld [vmem:[#allocation7 + $0x38] sm:$0xff]  ;;  %v90_v25 = vld [vmem:[#allocation8] sm:$0xff]  ;;  %v91_v26 = vld [vmem:[#allocation8 + $0x8] sm:$0xff]  ;;  %p731_p7 = por %p730_p6, %p729_p5 }
  0x50   :  { %v592_v24 = vpack.c.bf16 %v89_v23, %v88_v22  ;;  %v595_v27 = vpack.c.bf16 %v91_v26, %v90_v25  ;;  %v92_v28 = vld [vmem:[#allocation8 + $0x10] sm:$0xff]  ;;  %v93_v29 = vld [vmem:[#allocation8 + $0x18] sm:$0xff] }
  0x51   :  { %581 = vmatpush3.bf16.msra.mxu0 %v580_v7  ;;  %603 = vmatpush3.bf16.msra.mxu1 %v580_v7  ;;  %v598_v30 = vpack.c.bf16 %v93_v29, %v92_v28  ;;  %p732_p8 = pnand %p731_p7, %p725_p4 }
  0x52   :  { %582 = vmatprep.subr.bf16.mxu1 %v760_v0  ;;  %594 = vmatprep.subr.bf16.mxu0 %v760_v0 }
  0x54   :  { %508 = vmatmul.mubr.msk.f32.vlgmr.msra.gmra.mrb[0].mxu0 %vm94_vm1, %v73_v10  ;;  %514 = vmatmul.mubr.msk.f32.vlgmr.msra.gmra.mrb[0].mxu1 %vm94_vm1, %v75_v11 }
  0x55   :  { %510 = vmatprep.mubr.msk.f32.mxu0 %vm761_vm0, %v762_v1  ;;  %516 = vmatprep.mubr.msk.f32.mxu1 %vm761_vm0, %v762_v1 }
  0x56   :  { %584 = vmatpush3.bf16.msra.mxu1 %v583_v12  ;;  %596 = vmatpush3.bf16.msra.mxu0 %v595_v27 }
  0x57   :  { %585 = vmatprep.subr.bf16.mxu1 %v760_v0  ;;  %597 = vmatprep.subr.bf16.mxu0 %v760_v0 }
  0x58   :  { %511 = vmatmul.mubr.msk.f32.gmra.mrb[2].mxu0 %vm94_vm1, %v74_v13  ;;  %517 = vmatmul.mubr.msk.f32.gmra.mrb[2].mxu1 %vm94_vm1, %v76_v14 }
  0x59   :  { %519 = vmatprep.mubr.msk.f32.mxu1 %vm761_vm0, %v762_v1  ;;  %561 = vmatprep.mubr.msk.f32.mxu0 %vm761_vm0, %v762_v1 }
  0x5a   :  { %587 = vmatpush3.bf16.msra.mxu1 %v586_v18  ;;  %599 = vmatpush3.bf16.msra.mxu0 %v598_v30 }
  0x5b   :  { %588 = vmatprep.subr.bf16.mxu1 %v760_v0 }
  0x5c   :  { %520 = vmatmul.mubr.msk.f32.gmra.mrb[4].mxu1 %vm94_vm1, %v77_v15 }
  0x5d   :  { %538 = vmatprep.mubr.msk.f32.mxu1 %vm761_vm0, %v762_v1  ;;  %562 = vmatmul.mubr.msk.f32.vlgmr.msra.gmra.mrb[4].mxu0 %vm94_vm1, %v73_v10 }
  0x5e   :  { %590 = vmatpush3.bf16.msra.mxu1 %v589_v21  ;;  %564 = vmatprep.mubr.msk.f32.mxu0 %vm761_vm0, %v762_v1 }
  0x5f   :  { %591 = vmatprep.subr.bf16.mxu1 %v760_v0 }
  0x61   :  { %565 = vmatmul.mubr.msk.f32.gmra.mrb[6].mxu0 %vm94_vm1, %v74_v13 }
  0x62   :  { %593 = vmatpush3.bf16.msra.mxu1 %v592_v24  ;;  %567 = vmatprep.mubr.msk.f32.mxu0 %vm761_vm0, %v762_v1 }
  0x65   :  { %568 = vmatmul.mubr.msk.f32.gmra.mrb[8].mxu0 %vm94_vm1, %v75_v11 }
  0x66   :  { %570 = vmatprep.mubr.msk.f32.mxu0 %vm761_vm0, %v762_v1 }
  0x69   :  { %571 = vmatmul.mubr.msk.f32.gmra.mrb[10].mxu0 %vm94_vm1, %v76_v14 }
  0x6a   :  { %573 = vmatprep.mubr.msk.f32.mxu0 %vm761_vm0, %v762_v1 }
  0x6d   :  { %574 = vmatmul.mubr.msk.f32.gmra.mrb[12].mxu0 %vm94_vm1, %v77_v15 }
 0x127   :  { %v176_v31 = vpop.f32.mrb[0].mxu0  ;;  %v186_v32 = vpop.f32.mrb[0].mxu1 }
 0x128   :  { %614 = vtanh.f32 %v176_v31  ;;  %v509_v33 = vpop.f32.mrb[1].mxu0  ;;  %v515_v34 = vpop.f32.mrb[1].mxu1 }
 0x12b   :  { %v181_v35 = vpop.f32.mrb[2].mxu0  ;;  %v191_v36 = vpop.f32.mrb[2].mxu1 }
 0x12c   :  { %616 = vtanh.f32 %v181_v35  ;;  %v512_v37 = vpop.f32.mrb[3].mxu0  ;;  %v518_v38 = vpop.f32.mrb[3].mxu1 }
 0x12d   :  { %618 = vtanh.f32 %v186_v32 }
 0x12e   :  { %620 = vtanh.f32 %v191_v36 }
 0x12f   :  { %v196_v39 = vpop.f32.mrb[4].mxu1 }
 0x130   :  { %v521_v40 = vpop.f32.mrb[5].mxu1  ;;  %622 = vtanh.f32 %v196_v39  ;;  %v377_v46 = vpop.f32.mrb[4].mxu0 }
 0x131   :  { %v563_v47 = vpop.f32.mrb[5].mxu0 }
 0x132   :  { %v615_v41 = vpop.eup %614 }
 0x133   :  { %539 = vmatmul.mubr.msk.f32.vlgmr.msra.gmra.mrb[6].mxu1 %vm205_vm2, %v615_v41 }
 0x134   :  { %541 = vmatprep.mubr.msk.f32.mxu1 %vm761_vm0, %v762_v1  ;;  %v382_v48 = vpop.f32.mrb[6].mxu0 }
 0x135   :  { %v566_v49 = vpop.f32.mrb[7].mxu0 }
 0x136   :  { %v617_v42 = vpop.eup %616 }
 0x137   :  { %542 = vmatmul.mubr.msk.f32.gmra.mrb[8].mxu1 %vm205_vm2, %v617_v42  ;;  %v619_v43 = vpop.eup %618 }
 0x138   :  { %544 = vmatprep.mubr.msk.f32.mxu1 %vm761_vm0, %v762_v1  ;;  %v621_v44 = vpop.eup %620  ;;  %v387_v50 = vpop.f32.mrb[8].mxu0 }
 0x139   :  { %v569_v51 = vpop.f32.mrb[9].mxu0 }
 0x13a   :  { %v623_v45 = vpop.eup %622 }
 0x13b   :  { %545 = vmatmul.mubr.msk.f32.gmra.mrb[10].mxu1 %vm205_vm2, %v619_v43 }
 0x13c   :  { %547 = vmatprep.mubr.msk.f32.mxu1 %vm761_vm0, %v762_v1  ;;  %v392_v52 = vpop.f32.mrb[10].mxu0 }
 0x13d   :  { %v572_v53 = vpop.f32.mrb[11].mxu0 }
 0x13f   :  { %548 = vmatmul.mubr.msk.f32.gmra.mrb[12].mxu1 %vm205_vm2, %v621_v44 }
 0x140   :  { %550 = vmatprep.mubr.msk.f32.mxu1 %vm761_vm0, %v762_v1  ;;  %v397_v54 = vpop.f32.mrb[12].mxu0 }
 0x141   :  { %v575_v55 = vpop.f32.mrb[13].mxu0 }
 0x143   :  { %551 = vmatmul.mubr.msk.f32.gmra.mrb[14].mxu1 %vm205_vm2, %v623_v45 }
 0x206   :  { %v287_v56 = vpop.f32.mrb[6].mxu1 }
 0x207   :  { %v540_v57 = vpop.f32.mrb[7].mxu1 }
 0x20a   :  { %v292_v58 = vpop.f32.mrb[8].mxu1 }
 0x20b   :  { %v401_v59 = vmax.f32 %v287_v56, %v292_v58  ;;  %v543_v60 = vpop.f32.mrb[9].mxu1 }
 0x20e   :  { %v297_v61 = vpop.f32.mrb[10].mxu1 }
 0x20f   :  { %v402_v62 = vmax.f32 %v401_v59, %v297_v61  ;;  %v546_v63 = vpop.f32.mrb[11].mxu1 }
 0x212   :  { %v302_v0 = vpop.f32.mrb[12].mxu1 }
 0x213   :  { %v403_v1 = vmax.f32 %v402_v62, %v302_v0  ;;  %v549_v2 = vpop.f32.mrb[13].mxu1 }
 0x216   :  { %v307_v3 = vpop.f32.mrb[14].mxu1 }
 0x217   :  { %v404_v4 = vmax.f32 %v403_v1, %v307_v3  ;;  %v552_v5 = vpop.f32.mrb[15].mxu1 }
 0x219   :  { %v427_v6 = vsub.f32 %v307_v3, %v404_v4  ;;  %v405_v7 = vsub.f32 %v287_v56, %v404_v4  ;;  %v409_v8 = vsub.f32 %v292_v58, %v404_v4  ;;  %v415_v9 = vsub.f32 %v297_v61, %v404_v4 }
 0x21a   :  { %v421_v10 = vsub.f32 %v302_v0, %v404_v4 }
 0x21b   :  { %v428_v11 = vmul.f32 1.442695, %v427_v6  ;;  %v406_v12 = vmul.f32 1.442695, %v405_v7  ;;  %v410_v13 = vmul.f32 1.442695, %v409_v8 }
 0x21c   :  { %v416_v14 = vmul.f32 1.442695, %v415_v9  ;;  %v422_v15 = vmul.f32 1.442695, %v421_v10 }
 0x21d   :  { %624 = vpow2.f32 %v428_v11 }
 0x21e   :  { %626 = vpow2.f32 %v406_v12 }
 0x21f   :  { %628 = vpow2.f32 %v410_v13 }
 0x220   :  { %630 = vpow2.f32 %v416_v14 }
 0x221   :  { %632 = vpow2.f32 %v422_v15 }
 0x227   :  { %v625_v16 = vpop.eup %624 }
 0x228   :  { %v627_v17 = vpop.eup %626  ;;  %v431_v18 = vmul.f32 %v625_v16, %v397_v54 }
 0x229   :  { %v629_v19 = vpop.eup %628  ;;  %v408_v20 = vmul.f32 %v627_v17, %v377_v46 }
 0x22a   :  { %v631_v21 = vpop.eup %630  ;;  %v413_v22 = vmul.f32 %v629_v19, %v382_v48  ;;  %v412_v23 = vadd.f32 %v629_v19, %v627_v17 }
 0x22b   :  { %v633_v24 = vpop.eup %632  ;;  %v419_v25 = vmul.f32 %v631_v21, %v387_v50 }
 0x22c   :  { %v414_v26 = vadd.f32 %v413_v22, %v408_v20  ;;  %v425_v27 = vmul.f32 %v633_v24, %v392_v52  ;;  %v418_v28 = vadd.f32 %v631_v21, %v412_v23 }
 0x22e   :  { %v420_v29 = vadd.f32 %v419_v25, %v414_v26  ;;  %v424_v30 = vadd.f32 %v633_v24, %v418_v28 }
 0x230   :  { %v426_v31 = vadd.f32 %v425_v27, %v420_v29  ;;  %v430_v32 = vadd.f32 %v625_v16, %v424_v30 }
 0x232   :  { %v432_v33 = vadd.f32 %v431_v18, %v426_v31  ;;  %634 = vrcp.f32 %v430_v32 }
 0x23c   :  { %v635_v34 = vpop.eup %634 }
 0x23d   :  { %v434_v35 = vmul.f32 %v635_v34, %v432_v33 }
 0x23f   :  { %435 = vst [vmem:[#allocation10] sm:$0xff] %v434_v35 }
 0x240   :  { %735 = shalt.err (!%p732_p8)
}
 0x241   :  { %s736_s13 = scalar_lea.hbm %s924_s4, 128 }
 0x242   :  { %p737_p9 = scmp.ne.s32.totalorder %s924_s4, %s736_s13  ;;  %p740_p10 = scmp.lt.u32.totalorder %s736_s13, %s924_s4 }
 0x244   :  { %p742_p11 = pnand %p740_p10, %p737_p9 }
 0x246   :  { %745 = shalt.err (!%p742_p11)
}
 0x247   :  { %445 = dma.vmem_to_hbm [thread:$0]  %s443_s27, 128, %s924_s4, [#allocation4]  }
 0x248   :  { %752 = dma.done.wait [#allocation4], 128  }
 0x249   :  { %753 = vsyncadd [#allocation4], 4294967168 }
 0x24a   :  { %449 = vsyncpa [#allocation3], 1 }
 0x24b   :  { %450 = vsyncpa [#allocation6], 1 }
 0x24c   :  { %451 = vsyncpa [#allocation9], 1 }
 0x24d   :  { %452 = vsyncpa [#allocation4], 1 }

</bundles_post_ra>
